<compile_context>
chip_gen: v5e
topology: v5e:2x2
jax: 0.10.0
libtpu: 0.0.40
codegen_flags: <defaults>
</compile_context>

<pallas_src>
import functools

import jax
import jax.numpy as jnp
import numpy as np
from jax import lax
from jax.experimental import pallas as pl
from jax.experimental.pallas import tpu as pltpu

EXPANSION = 4
_LANE = 128


def _vmem_capacity_bytes():
    """Best-effort per-core VMEM capacity; falls back to 128 MiB (v5e/v6e)."""
    default = 128 * 2 ** 20
    try:
        info = pltpu.get_tpu_info()
    except Exception:
        return default
    for attr in ("vmem_capacity_bytes", "vmem_bytes", "vmem_capacity"):
        v = getattr(info, attr, None)
        if v:
            return int(v)
    return default


def _bottleneck_kernel(x_ref, mask_ref, w1_ref, w2_ref, w3_ref,
                       b1_ref, b2_ref, b3_ref, out_ref, *scratch,
                       Wb, fuse_taps):
    cdtype = x_ref.dtype
    L = x_ref.shape[-1]
    mid = w1_ref.shape[0]

    # ---- conv1 (1x1, BN scale folded into w1) + bias + relu ----------------
    y1 = jnp.dot(w1_ref[...], x_ref[...], preferred_element_type=jnp.float32)
    # Zero the spatial halo / lane padding so conv2's rolls only read true
    # zeros for interior output pixels.
    y1 = jnp.maximum(y1 + b1_ref[...], 0.0) * mask_ref[...]
    y1c = y1.astype(cdtype)

    # ---- conv2 (3x3, pad=1) -------------------------------------------------
    def tap(ky, kx):
        s = (ky - 1) * Wb + (kx - 1)
        return y1c if s == 0 else pltpu.roll(y1c, shift=(-s) % L, axis=1)

    if fuse_taps:
        # Small mid: write the 9 shifted copies directly into a persistent
        # VMEM scratch (no jnp.concatenate double-materialization), then one
        # wide-K MXU matmul against the stacked contraction axis.
        stacked_ref, = scratch
        t = 0
        for ky in range(3):
            for kx in range(3):
                stacked_ref[pl.ds(t * mid, mid), :] = tap(ky, kx)
                t += 1
        y2 = jnp.dot(w2_ref[...], stacked_ref[...],
                     preferred_element_type=jnp.float32)
    else:
        # Large mid (K already fills the MXU depth): 9 accumulating matmuls;
        # each rolled tap is transient, so there is no staging buffer at all.
        w2 = w2_ref[...]
        y2 = None
        t = 0
        for ky in range(3):
            for kx in range(3):
                contrib = jnp.dot(w2[:, t * mid:(t + 1) * mid], tap(ky, kx),
                                  preferred_element_type=jnp.float32)
                y2 = contrib if y2 is None else y2 + contrib
                t += 1

    y2 = jnp.maximum(y2 + b2_ref[...], 0.0)
    y2c = y2.astype(cdtype)

    # ---- conv3 (1x1) + bn3 bias --------------------------------------------
    y3 = jnp.dot(w3_ref[...], y2c, preferred_element_type=jnp.float32) + b3_ref[...]

    # ---- double residual add + relu (the module really does this twice) ----
    identity = x_ref[...].astype(jnp.float32)   # cast folded into the epilogue
    out = jnp.maximum(y3 + identity, 0.0)
    out = jnp.maximum(out + identity, 0.0)
    out_ref[...] = out.astype(out_ref.dtype)


def bottleneck_forward(x_nchw, params, *, compute_dtype=jnp.bfloat16):
    """x_nchw: (N, Cin, H, W), Cin == mid * EXPANSION (stride=1, no downsample)."""
    N, Cin, H, W = x_nchw.shape
    mid = params["w1"].shape[0]
    cout = mid * EXPANSION
    assert Cin == cout, "identity add requires in_channel == mid_channel * 4"

    Hb, Wb = H + 2, W + 2                 # +1 halo each side for the 3x3 conv
    HWb = Hb * Wb
    HWp = ((HWb + _LANE - 1) // _LANE) * _LANE   # lane-dense (multiple of 128)

    eps = 1e-5

    def fold_bn(gamma, beta, mean, var):
        scale = gamma / jnp.sqrt(var + eps)
        return scale, beta - mean * scale

    s1, b1 = fold_bn(*params["bn1"])
    s2, b2 = fold_bn(*params["bn2"])
    s3, b3 = fold_bn(*params["bn3"])

    cdtype = compute_dtype
    csize = jnp.dtype(cdtype).itemsize

    # BN scales folded into the conv weights (one-time op on tiny tensors).
    w1 = (params["w1"] * s1[:, None]).astype(cdtype)                     # (mid, Cin)
    # OIHW -> (O, KH, KW, I) -> (mid, 9*mid); column order matches the tap order.
    w2 = (jnp.transpose(params["w2"], (0, 2, 3, 1)).reshape(mid, 9 * mid)
          * s2[:, None]).astype(cdtype)
    w3 = (params["w3"] * s3[:, None]).astype(cdtype)                     # (cout, mid)
    b1 = b1.reshape(mid, 1).astype(jnp.float32)
    b2 = b2.reshape(mid, 1).astype(jnp.float32)
    b3 = b3.reshape(cout, 1).astype(jnp.float32)

    # Fuse the 9 taps into one wide-K matmul only while 9*mid stays within the
    # MXU contraction depth; otherwise accumulate (no staging buffer).
    fuse_taps = (9 * mid) <= 256

    def live_bytes(L):
        b = 0
        b += 2 * Cin * L * csize                 # x block (double buffered)
        b += 2 * cout * L * csize                # out block (double buffered, cdtype)
        b += mid * L * (4 + csize)               # y1 f32 + cast
        b += (9 * mid * L * csize) if fuse_taps else (mid * L * csize)  # taps
        b += mid * L * (4 + csize)               # y2 f32 + cast
        b += cout * L * 4                        # y3 / out f32 temporaries
        b += Cin * L * 4                         # identity f32 (epilogue only)
        b += L * 4                               # interior mask
        b += (mid * Cin + 9 * mid * mid + cout * mid) * csize            # weights
        return b

    # Generation-aware VMEM budgeting: v7x has 64 MiB per TensorCore, v5e/v6e
    # have 128 MiB (v5e's *default scoped* limit is only 16 MiB -> always set
    # vmem_limit_bytes below).
    vmem_cap = _vmem_capacity_bytes()
    if vmem_cap <= 64 * 2 ** 20:
        lane_target, vmem_budget, vmem_limit_cap = 4096, 26 * 2 ** 20, 52 * 2 ** 20
    else:
        lane_target, vmem_budget, vmem_limit_cap = 8192, 48 * 2 ** 20, 100 * 2 ** 20

    # Keep >= min(N, 4) grid steps so v7x's two TensorCores can both be used
    # and first/last-block DMA is pipelined; pad the batch so the per-step
    # image-group size g need not divide N.
    min_steps = min(N, 4)
    max_g = max(1, N // max(min_steps, 1))
    g = 1
    for cand in range(1, max_g + 1):
        L = cand * HWp
        if cand > 1 and (L > lane_target or live_bytes(L) > vmem_budget):
            break
        g = cand
    L = g * HWp
    steps = -(-N // g)
    Np = steps * g

    # Zero spatial halo + lane padding, pad the batch, fold batch into lanes.
    x_pad = jnp.pad(x_nchw, ((0, 0), (0, 0), (1, 1), (1, 1)))
    x_pad = x_pad.reshape(N, Cin, HWb)
    x_pad = jnp.pad(x_pad, ((0, Np - N), (0, 0), (0, HWp - HWb)))
    x_lanes = jnp.transpose(x_pad, (1, 0, 2)).reshape(Cin, Np * HWp).astype(cdtype)

    # Interior mask (1 at valid pixels, 0 at halo / lane padding), per image.
    m2d = np.zeros((Hb, Wb), np.float32)
    m2d[1:-1, 1:-1] = 1.0
    m1d = np.zeros((HWp,), np.float32)
    m1d[:HWb] = m2d.reshape(-1)
    mask = jnp.asarray(np.tile(m1d, g).reshape(1, L))

    est = live_bytes(L)
    vmem_limit = int(min(vmem_limit_cap, max(est * 1.3, 32 * 2 ** 20)))
    # TODO(synk): if a single image group ever exceeds the per-generation
    # budget (e.g. 56x56 x Cin=256 on v7x), add a second halo'd spatial
    # row-tile grid axis instead of raising the limit further.

    kernel = functools.partial(_bottleneck_kernel, Wb=Wb, fuse_taps=fuse_taps)
    scratch_shapes = [pltpu.VMEM((9 * mid, L), cdtype)] if fuse_taps else []

    out_lanes = pl.pallas_call(
        kernel,
        out_shape=jax.ShapeDtypeStruct((cout, Np * HWp), cdtype),
        grid=(steps,),
        in_specs=[
            pl.BlockSpec((Cin, L), lambda i: (0, i)),          # x
            pl.BlockSpec((1, L), lambda i: (0, 0)),            # interior mask
            pl.BlockSpec((mid, Cin), lambda i: (0, 0)),        # w1 (BN folded)
            pl.BlockSpec((mid, 9 * mid), lambda i: (0, 0)),    # w2 taps (BN folded)
            pl.BlockSpec((cout, mid), lambda i: (0, 0)),       # w3 (BN folded)
            pl.BlockSpec((mid, 1), lambda i: (0, 0)),          # bn1 bias
            pl.BlockSpec((mid, 1), lambda i: (0, 0)),          # bn2 bias
            pl.BlockSpec((cout, 1), lambda i: (0, 0)),         # bn3 bias
        ],
        out_specs=pl.BlockSpec((cout, L), lambda i: (0, i)),
        scratch_shapes=scratch_shapes,
        compiler_params=pltpu.CompilerParams(
            dimension_semantics=("parallel",),
            vmem_limit_bytes=vmem_limit),
    )(x_lanes, mask, w1, w2, w3, b1, b2, b3)

    out = out_lanes.reshape(cout, Np, HWp).transpose(1, 0, 2)[:N, :, :HWb]
    out = out.reshape(N, cout, Hb, Wb)[:, :, 1:-1, 1:-1]
    return out.astype(x_nchw.dtype)


# ------------------------- pure-JAX reference ---------------------------------
def bottleneck_reference(x, params):
    eps = 1e-5

    def bn(y, gamma, beta, mean, var):
        g = gamma[None, :, None, None]
        b = beta[None, :, None, None]
        m = mean[None, :, None, None]
        v = var[None, :, None, None]
        return (y - m) / jnp.sqrt(v + eps) * g + b

    identity = x
    out = jnp.einsum("nchw,oc->nohw", x, params["w1"])
    out = jax.nn.relu(bn(out, *params["bn1"]))
    out = lax.conv_general_dilated(
        out, params["w2"], window_strides=(1, 1), padding=((1, 1), (1, 1)),
        dimension_numbers=("NCHW", "OIHW", "NCHW"))
    out = jax.nn.relu(bn(out, *params["bn2"]))
    out = jnp.einsum("nchw,oc->nohw", out, params["w3"])
    out = bn(out, *params["bn3"])
    out = jax.nn.relu(out + identity)
    out = jax.nn.relu(out + identity)
    return out


if __name__ == "__main__":
    # Small deterministic shapes: batch=2, mid_channel=4 -> in/out channels=16,
    # spatial 16x16, stride=1, downsample=None.
    N, mid, H, W = 2, 4, 16, 16
    Cin = mid * EXPANSION
    Cout = mid * EXPANSION

    key = jax.random.PRNGKey(0)
    ks = jax.random.split(key, 12)

    params = {
        "w1": 0.1 * jax.random.normal(ks[0], (mid, Cin), jnp.float32),
        "w2": 0.1 * jax.random.normal(ks[1], (mid, mid, 3, 3), jnp.float32),
        "w3": 0.1 * jax.random.normal(ks[2], (Cout, mid), jnp.float32),
        "bn1": (jax.random.uniform(ks[3], (mid,), minval=0.5, maxval=1.5),
                0.1 * jax.random.normal(ks[4], (mid,)),
                0.1 * jax.random.normal(ks[5], (mid,)),
                jax.random.uniform(ks[6], (mid,), minval=0.5, maxval=1.5)),
        "bn2": (jax.random.uniform(ks[7], (mid,), minval=0.5, maxval=1.5),
                0.1 * jax.random.normal(ks[8], (mid,)),
                0.1 * jax.random.normal(ks[9], (mid,)),
                jax.random.uniform(ks[10], (mid,), minval=0.5, maxval=1.5)),
        "bn3": (jnp.ones((Cout,), jnp.float32),
                jnp.zeros((Cout,), jnp.float32),
                jnp.zeros((Cout,), jnp.float32),
                jnp.ones((Cout,), jnp.float32)),
    }

    x = jax.random.normal(ks[11], (N, Cin, H, W), jnp.float32)

    ref = jax.block_until_ready(bottleneck_reference(x, params))

    # f32 path: exact-ish check against the reference.
    out_f32 = jax.block_until_ready(
        bottleneck_forward(x, params, compute_dtype=jnp.float32))
    np.testing.assert_allclose(np.asarray(out_f32), np.asarray(ref),
                               rtol=2e-4, atol=2e-4)

    # bf16 MXU path (f32 accumulation, bf16 output stream): looser tolerance.
    out_bf16 = jax.block_until_ready(
        bottleneck_forward(x, params, compute_dtype=jnp.bfloat16))
    np.testing.assert_allclose(np.asarray(out_bf16), np.asarray(ref),
                               rtol=5e-2, atol=5e-2)

    print("KERNEL_OK")
</pallas_src>

<mosaic_0001>
module attributes {stable_mosaic.version = 11 : i64} {
  func.func @_bottleneck_kernel(%arg0: i32, %arg1: memref<16x384xf32, #tpu.memory_space<vmem>>, %arg2: memref<1x384xf32, #tpu.memory_space<vmem>>, %arg3: memref<4x16xf32, #tpu.memory_space<vmem>>, %arg4: memref<4x36xf32, #tpu.memory_space<vmem>>, %arg5: memref<16x4xf32, #tpu.memory_space<vmem>>, %arg6: memref<4x1xf32, #tpu.memory_space<vmem>>, %arg7: memref<4x1xf32, #tpu.memory_space<vmem>>, %arg8: memref<16x1xf32, #tpu.memory_space<vmem>>, %arg9: memref<16x384xf32, #tpu.memory_space<vmem>>, %arg10: memref<36x384xf32, #tpu.memory_space<vmem>>) attributes {dimension_semantics = [#tpu.dimension_semantics<parallel>], iteration_bounds = array<i64: 2>, scalar_prefetch = 0 : i64, scratch_operands = 1 : i64, tpu.core_type = #tpu.core_type<tc>, window_params = [{transform_indices = @transform_0, window_bounds = array<i64: 16, 384>}, {pipeline_mode = #tpu.pipeline_mode<synchronous>, transform_indices = @transform_1, window_bounds = array<i64: 1, 384>}, {pipeline_mode = #tpu.pipeline_mode<synchronous>, transform_indices = @transform_2, window_bounds = array<i64: 4, 16>}, {pipeline_mode = #tpu.pipeline_mode<synchronous>, transform_indices = @transform_3, window_bounds = array<i64: 4, 36>}, {pipeline_mode = #tpu.pipeline_mode<synchronous>, transform_indices = @transform_4, window_bounds = array<i64: 16, 4>}, {pipeline_mode = #tpu.pipeline_mode<synchronous>, transform_indices = @transform_5, window_bounds = array<i64: 4, 1>}, {pipeline_mode = #tpu.pipeline_mode<synchronous>, transform_indices = @transform_6, window_bounds = array<i64: 4, 1>}, {pipeline_mode = #tpu.pipeline_mode<synchronous>, transform_indices = @transform_7, window_bounds = array<i64: 16, 1>}, {transform_indices = @transform_8, window_bounds = array<i64: 16, 384>}]} {
    %c0 = arith.constant 0 : index
    %c0_0 = arith.constant 0 : index
    %0 = vector.load %arg3[%c0, %c0_0] : memref<4x16xf32, #tpu.memory_space<vmem>>, vector<4x16xf32>
    %c0_1 = arith.constant 0 : index
    %c0_2 = arith.constant 0 : index
    %1 = vector.load %arg1[%c0_1, %c0_2] : memref<16x384xf32, #tpu.memory_space<vmem>>, vector<16x384xf32>
    %cst = arith.constant dense<0.000000e+00> : vector<4x384xf32>
    %2 = tpu.matmul %0, %1, %cst {dimension_numbers = #tpu.dot_dimension_numbers<[1], [0], [0], [1], [0, 0, 1, 1], [], []>} : vector<4x16xf32>, vector<16x384xf32>, vector<4x384xf32> -> vector<4x384xf32>
    %c0_3 = arith.constant 0 : index
    %c0_4 = arith.constant 0 : index
    %3 = vector.load %arg6[%c0_3, %c0_4] : memref<4x1xf32, #tpu.memory_space<vmem>>, vector<4x1xf32>
    %4 = vector.broadcast %3 : vector<4x1xf32> to vector<4x384xf32>
    %5 = arith.addf %2, %4 : vector<4x384xf32>
    %cst_5 = arith.constant 0.000000e+00 : f32
    %6 = vector.broadcast %cst_5 : f32 to vector<4x384xf32>
    %7 = arith.maximumf %5, %6 : vector<4x384xf32>
    %c0_6 = arith.constant 0 : index
    %c0_7 = arith.constant 0 : index
    %8 = vector.load %arg2[%c0_6, %c0_7] : memref<1x384xf32, #tpu.memory_space<vmem>>, vector<1x384xf32>
    %9 = vector.broadcast %8 : vector<1x384xf32> to vector<4x384xf32>
    %10 = arith.mulf %7, %9 : vector<4x384xf32>
    %c19_i32 = arith.constant 19 : i32
    %11 = tpu.dynamic_rotate %10 by %c19_i32 dim 1 : vector<4x384xf32>, i32 -> vector<4x384xf32>
    %c0_8 = arith.constant 0 : index
    %c0_9 = arith.constant 0 : index
    %12 = vector.load %arg10[%c0_8, %c0_9] : memref<36x384xf32, #tpu.memory_space<vmem>>, vector<4x384xf32>
    tpu.vector_store %arg10[%c0_8, %c0_9], %11 {strides = array<i32>} : memref<36x384xf32, #tpu.memory_space<vmem>>, vector<4x384xf32>,
    %c18_i32 = arith.constant 18 : i32
    %13 = tpu.dynamic_rotate %10 by %c18_i32 dim 1 : vector<4x384xf32>, i32 -> vector<4x384xf32>
    %c4 = arith.constant 4 : index
    %c0_10 = arith.constant 0 : index
    %14 = vector.load %arg10[%c4, %c0_10] : memref<36x384xf32, #tpu.memory_space<vmem>>, vector<4x384xf32>
    tpu.vector_store %arg10[%c4, %c0_10], %13 {strides = array<i32>} : memref<36x384xf32, #tpu.memory_space<vmem>>, vector<4x384xf32>,
    %c17_i32 = arith.constant 17 : i32
    %15 = tpu.dynamic_rotate %10 by %c17_i32 dim 1 : vector<4x384xf32>, i32 -> vector<4x384xf32>
    %c8 = arith.constant 8 : index
    %c0_11 = arith.constant 0 : index
    %16 = vector.load %arg10[%c8, %c0_11] : memref<36x384xf32, #tpu.memory_space<vmem>>, vector<4x384xf32>
    tpu.vector_store %arg10[%c8, %c0_11], %15 {strides = array<i32>} : memref<36x384xf32, #tpu.memory_space<vmem>>, vector<4x384xf32>,
    %c1_i32 = arith.constant 1 : i32
    %17 = tpu.dynamic_rotate %10 by %c1_i32 dim 1 : vector<4x384xf32>, i32 -> vector<4x384xf32>
    %c12 = arith.constant 12 : index
    %c0_12 = arith.constant 0 : index
    %18 = vector.load %arg10[%c12, %c0_12] : memref<36x384xf32, #tpu.memory_space<vmem>>, vector<4x384xf32>
    tpu.vector_store %arg10[%c12, %c0_12], %17 {strides = array<i32>} : memref<36x384xf32, #tpu.memory_space<vmem>>, vector<4x384xf32>,
    %c16 = arith.constant 16 : index
    %c0_13 = arith.constant 0 : index
    %19 = vector.load %arg10[%c16, %c0_13] : memref<36x384xf32, #tpu.memory_space<vmem>>, vector<4x384xf32>
    tpu.vector_store %arg10[%c16, %c0_13], %10 {strides = array<i32>} : memref<36x384xf32, #tpu.memory_space<vmem>>, vector<4x384xf32>,
    %c383_i32 = arith.constant 383 : i32
    %20 = tpu.dynamic_rotate %10 by %c383_i32 dim 1 : vector<4x384xf32>, i32 -> vector<4x384xf32>
    %c20 = arith.constant 20 : index
    %c0_14 = arith.constant 0 : index
    %21 = vector.load %arg10[%c20, %c0_14] : memref<36x384xf32, #tpu.memory_space<vmem>>, vector<4x384xf32>
    tpu.vector_store %arg10[%c20, %c0_14], %20 {strides = array<i32>} : memref<36x384xf32, #tpu.memory_space<vmem>>, vector<4x384xf32>,
    %c367_i32 = arith.constant 367 : i32
    %22 = tpu.dynamic_rotate %10 by %c367_i32 dim 1 : vector<4x384xf32>, i32 -> vector<4x384xf32>
    %c24 = arith.constant 24 : index
    %c0_15 = arith.constant 0 : index
    %23 = vector.load %arg10[%c24, %c0_15] : memref<36x384xf32, #tpu.memory_space<vmem>>, vector<4x384xf32>
    tpu.vector_store %arg10[%c24, %c0_15], %22 {strides = array<i32>} : memref<36x384xf32, #tpu.memory_space<vmem>>, vector<4x384xf32>,
    %c366_i32 = arith.constant 366 : i32
    %24 = tpu.dynamic_rotate %10 by %c366_i32 dim 1 : vector<4x384xf32>, i32 -> vector<4x384xf32>
    %c28 = arith.constant 28 : index
    %c0_16 = arith.constant 0 : index
    %25 = vector.load %arg10[%c28, %c0_16] : memref<36x384xf32, #tpu.memory_space<vmem>>, vector<4x384xf32>
    tpu.vector_store %arg10[%c28, %c0_16], %24 {strides = array<i32>} : memref<36x384xf32, #tpu.memory_space<vmem>>, vector<4x384xf32>,
    %c365_i32 = arith.constant 365 : i32
    %26 = tpu.dynamic_rotate %10 by %c365_i32 dim 1 : vector<4x384xf32>, i32 -> vector<4x384xf32>
    %c32 = arith.constant 32 : index
    %c0_17 = arith.constant 0 : index
    %27 = vector.load %arg10[%c32, %c0_17] : memref<36x384xf32, #tpu.memory_space<vmem>>, vector<4x384xf32>
    tpu.vector_store %arg10[%c32, %c0_17], %26 {strides = array<i32>} : memref<36x384xf32, #tpu.memory_space<vmem>>, vector<4x384xf32>,
    %c0_18 = arith.constant 0 : index
    %c0_19 = arith.constant 0 : index
    %28 = vector.load %arg4[%c0_18, %c0_19] : memref<4x36xf32, #tpu.memory_space<vmem>>, vector<4x36xf32>
    %c0_20 = arith.constant 0 : index
    %c0_21 = arith.constant 0 : index
    %29 = vector.load %arg10[%c0_20, %c0_21] : memref<36x384xf32, #tpu.memory_space<vmem>>, vector<36x384xf32>
    %cst_22 = arith.constant dense<0.000000e+00> : vector<4x384xf32>
    %30 = tpu.matmul %28, %29, %cst_22 {dimension_numbers = #tpu.dot_dimension_numbers<[1], [0], [0], [1], [0, 0, 1, 1], [], []>} : vector<4x36xf32>, vector<36x384xf32>, vector<4x384xf32> -> vector<4x384xf32>
    %c0_23 = arith.constant 0 : index
    %c0_24 = arith.constant 0 : index
    %31 = vector.load %arg7[%c0_23, %c0_24] : memref<4x1xf32, #tpu.memory_space<vmem>>, vector<4x1xf32>
    %32 = vector.broadcast %31 : vector<4x1xf32> to vector<4x384xf32>
    %33 = arith.addf %30, %32 : vector<4x384xf32>
    %cst_25 = arith.constant 0.000000e+00 : f32
    %34 = vector.broadcast %cst_25 : f32 to vector<4x384xf32>
    %35 = arith.maximumf %33, %34 : vector<4x384xf32>
    %c0_26 = arith.constant 0 : index
    %c0_27 = arith.constant 0 : index
    %36 = vector.load %arg5[%c0_26, %c0_27] : memref<16x4xf32, #tpu.memory_space<vmem>>, vector<16x4xf32>
    %cst_28 = arith.constant dense<0.000000e+00> : vector<16x384xf32>
    %37 = tpu.matmul %36, %35, %cst_28 {dimension_numbers = #tpu.dot_dimension_numbers<[1], [0], [0], [1], [0, 0, 1, 1], [], []>} : vector<16x4xf32>, vector<4x384xf32>, vector<16x384xf32> -> vector<16x384xf32>
    %c0_29 = arith.constant 0 : index
    %c0_30 = arith.constant 0 : index
    %38 = vector.load %arg8[%c0_29, %c0_30] : memref<16x1xf32, #tpu.memory_space<vmem>>, vector<16x1xf32>
    %39 = vector.broadcast %38 : vector<16x1xf32> to vector<16x384xf32>
    %40 = arith.addf %37, %39 : vector<16x384xf32>
    %c0_31 = arith.constant 0 : index
    %c0_32 = arith.constant 0 : index
    %41 = vector.load %arg1[%c0_31, %c0_32] : memref<16x384xf32, #tpu.memory_space<vmem>>, vector<16x384xf32>
    %42 = arith.addf %40, %41 : vector<16x384xf32>
    %cst_33 = arith.constant 0.000000e+00 : f32
    %43 = vector.broadcast %cst_33 : f32 to vector<16x384xf32>
    %44 = arith.maximumf %42, %43 : vector<16x384xf32>
    %45 = arith.addf %44, %41 : vector<16x384xf32>
    %cst_34 = arith.constant 0.000000e+00 : f32
    %46 = vector.broadcast %cst_34 : f32 to vector<16x384xf32>
    %47 = arith.maximumf %45, %46 : vector<16x384xf32>
    %c0_35 = arith.constant 0 : index
    %c0_36 = arith.constant 0 : index
    %48 = vector.load %arg9[%c0_35, %c0_36] : memref<16x384xf32, #tpu.memory_space<vmem>>, vector<16x384xf32>
    tpu.vector_store %arg9[%c0_35, %c0_36], %47 {strides = array<i32>} : memref<16x384xf32, #tpu.memory_space<vmem>>, vector<16x384xf32>,
    return
  }
  func.func @transform_0(%arg0: i32) -> (i32, i32) {
    %c0_i32 = arith.constant 0 : i32
    %c0_i32_0 = arith.constant 0 : i32
    return %c0_i32, %arg0 : i32, i32
  }
  func.func @transform_1(%arg0: i32) -> (i32, i32) {
    %c0_i32 = arith.constant 0 : i32
    %c0_i32_0 = arith.constant 0 : i32
    %c0_i32_1 = arith.constant 0 : i32
    return %c0_i32, %c0_i32_0 : i32, i32
  }
  func.func @transform_2(%arg0: i32) -> (i32, i32) {
    %c0_i32 = arith.constant 0 : i32
    %c0_i32_0 = arith.constant 0 : i32
    %c0_i32_1 = arith.constant 0 : i32
    return %c0_i32, %c0_i32_0 : i32, i32
  }
  func.func @transform_3(%arg0: i32) -> (i32, i32) {
    %c0_i32 = arith.constant 0 : i32
    %c0_i32_0 = arith.constant 0 : i32
    %c0_i32_1 = arith.constant 0 : i32
    return %c0_i32, %c0_i32_0 : i32, i32
  }
  func.func @transform_4(%arg0: i32) -> (i32, i32) {
    %c0_i32 = arith.constant 0 : i32
    %c0_i32_0 = arith.constant 0 : i32
    %c0_i32_1 = arith.constant 0 : i32
    return %c0_i32, %c0_i32_0 : i32, i32
  }
  func.func @transform_5(%arg0: i32) -> (i32, i32) {
    %c0_i32 = arith.constant 0 : i32
    %c0_i32_0 = arith.constant 0 : i32
    %c0_i32_1 = arith.constant 0 : i32
    return %c0_i32, %c0_i32_0 : i32, i32
  }
  func.func @transform_6(%arg0: i32) -> (i32, i32) {
    %c0_i32 = arith.constant 0 : i32
    %c0_i32_0 = arith.constant 0 : i32
    %c0_i32_1 = arith.constant 0 : i32
    return %c0_i32, %c0_i32_0 : i32, i32
  }
  func.func @transform_7(%arg0: i32) -> (i32, i32) {
    %c0_i32 = arith.constant 0 : i32
    %c0_i32_0 = arith.constant 0 : i32
    %c0_i32_1 = arith.constant 0 : i32
    return %c0_i32, %c0_i32_0 : i32, i32
  }
  func.func @transform_8(%arg0: i32) -> (i32, i32) {
    %c0_i32 = arith.constant 0 : i32
    %c0_i32_0 = arith.constant 0 : i32
    return %c0_i32, %arg0 : i32, i32
  }
}

</mosaic_0001>

<bundles_post_ra>
// kernel: tpu_custom_call.1
= control target key start
LH: loop header
LB: loop body
LE: loop exit
PB: predicated region body
PF: predicated region fallthrough
CT: control target
= control target key end

     0   :  { %13 = vsyncpa [#allocation4], 0  ;;  %s1422_s0 = inlined_call_operand.hbm [shape: f32[16,768], index: 0, kind: input, shape index: {}]   ;;  %s1423_s1 = inlined_call_operand.vmem [shape: f32[1,384], index: 1, kind: input, shape index: {}]   ;;  %s1424_s2 = inlined_call_operand.vmem [shape: f32[4,16], index: 2, kind: input, shape index: {}]   ;;  %s1425_s3 = inlined_call_operand.vmem [shape: f32[4,36], index: 3, kind: input, shape index: {}]   ;;  %s1426_s4 = inlined_call_operand.vmem [shape: f32[16,4], index: 4, kind: input, shape index: {}]   ;;  %s1427_s5 = inlined_call_operand.vmem [shape: f32[4,1], index: 5, kind: input, shape index: {}]   ;;  %s1428_s6 = inlined_call_operand.vmem [shape: f32[4,1], index: 6, kind: input, shape index: {}]   ;;  %s1429_s7 = inlined_call_operand.vmem [shape: f32[16,1], index: 7, kind: input, shape index: {}]   ;;  %s1430_s8 = inlined_call_operand.hbm [shape: f32[16,768], index: 8, kind: output, shape index: {}]  }
   0x1   :  { %15 = vsyncpa [#allocation4 + $0x1], 0 }
   0x2   :  { %16 = vsyncpa [#allocation5], 0 }
   0x3   :  { %18 = vsyncpa [#allocation5 + $0x1], 0  ;;  %s1140_s27 = smov 0   ;;  %s1142_s28 = smov 0  }
   0x4   :  { %s1144_s29 = smov 0   ;;  %s1146_s30 = smov 0  }
   0x5 LB: > { %1432 = sst [smem:[#allocation9_spill]] %s1074_s29  ;;  %s1161_s9 = sadd.s32 4294967295, %s1078_s30   ;;  %s1078_s30 = sphi %s1146_s30, %s1442_s30   ;;  %s1074_s29 = sphi %s1144_s29, %s1439_s29   ;;  %s1070_s28 = sphi %s1142_s28, %s1441_s28   ;;  %s1066_s27 = sphi %s1140_s27, %s1440_s27  }
   0x6   : > { %s887_s10 = sadd.s32 4294967294, %s1078_s30   ;;  %s1165_s11 = sadd.s32 1, %s1078_s30  }
   0x7   : > { %s31_s12 = sadd.s32 1, %s1074_s29  ;;  %s28_s13 = ssub.s32 %s1078_s30, %s1165_s11 }
   0x8   : > { %p38_p0 = scmp.ne.s32.totalorder %s1074_s29, %s1070_s28  ;;  %p29_p1 = scmp.eq.s32.totalorder %s28_s13, 0 }
   0x9   : > { %p39_p2 = scmp.eq.s32.totalorder %s1078_s30, 0  ;;  %p44_p3 = scmp.ne.s32.totalorder %s1070_s28, %s1066_s27 }
   0xa   : > { %p45_p4 = scmp.eq.s32.totalorder %s1161_s9, 0  ;;  %p215_p7 = scmp.eq.s32.totalorder %s1161_s9, 1 }
   0xb   : > { %s1177_s14 = scalar_select %p29_p1, %s1074_s29, %s31_s12  }
   0xc   : > { %p40_p5 = por %p39_p2, %p38_p0  ;;  %p1179_p6 = por %p45_p4, %p44_p3 }
   0xd   : > { %1433 = sst [smem:[#allocation10_spill]] %s1177_s14  ;;  %p221_p8 = scmp.eq.s32.totalorder %s887_s10, 1 }
   0xe   : > { %p889_p9 = scmp.ge.s32.totalorder %s1078_s30, 2  ;;  %p930_p10 = scmp.lt.s32.totalorder %s1078_s30, 2 }
   0xf   : > { %p1186_p11 = por %p215_p7, %p38_p0  ;;  %p1190_p12 = por %p221_p8, %p44_p3 }
  0x10   : > { %s262_s18 = sand.u32 1, %s1074_s29   ;;  %s913_s19 = smul.u32 24, %s1078_s30 }
  0x11   : > { %s916_s20 = smul.u32 48, %s262_s18  ;;  %p1199_p13 = pnand %p930_p10, %p40_p5 }
  0x12   : > { %s271_s23 = scalar_lea.hbm %s1422_s0, %s913_s19  ;;  %p891_p0 = scmp.ge.s32.totalorder %s1078_s30, 1 }
  0x13   : > { %s272_s25 = sshll.u32 %s271_s23, 4  ;;  %s266_s26 = scalar_lea.vmem [#allocation3], %s916_s20  ;;  %s273_s25 = int_to_ptr.hbm [resolvable:$true] %s272_s25 }
  0x14   : > { %s274_s10 = sshll.u32 %s266_s26, 4  ;;  %s263_s12 = scalar_lea.sflag [#allocation4], %s262_s18  ;;  %s275_s10 = int_to_ptr.vmem [resolvable:$true] %s274_s10 }
  0x15   : > { %s982_s13 = sshra.s32 %s273_s25, 4  ;;  %p986_p2 = pneg %p1199_p13  ;;  %s983_s13 = int_to_ptr.hbm [resolvable:$true] %s982_s13 }
  0x16   : > { %s984_s14 = scalar_lea.hbm %s983_s13, 48  ;;  %s989_s22 = scalar_lea.hbm %s1422_s0, 96 }
  0x17   : > { %p985_p1 = scmp.ne.s32.totalorder %s983_s13, %s984_s14  ;;  %p990_p5 = scmp.lt.s32.totalorder %s983_s13, %s1422_s0 }
  0x18   : > { %p991_p7 = scmp.lt.s32.totalorder %s989_s22, %s984_s14 }
  0x19   : > { %p987_p3 = pnand %p986_p2, %p985_p1 }
  0x1a   : > { %p992_p8 = por %p991_p7, %p990_p5 }
  0x1b   : > { %p988_p4 = pneg %p987_p3 }
  0x1d   : > { %p993_p10 = pnand %p992_p8, %p988_p4 }
  0x1f   : > { %996 = shalt.err (!%p993_p10)
}
  0x20   : > { %s1080_s18 = smov 768   ;;  %s1081_s20 = smov 384  }
  0x21   : > { %s1082_s26 = smov 24   ;;  %p282_p1 = scmp.lt.s32.totalorder %s1078_s30, 3 }
  0x22   : > { %925 = dma.hbm_to_vmem [thread:$0]  (!%p1199_p13), %s273_s25, 768, %s275_s10, %s263_s12, %s1080_s18, %s1081_s20, %s1082_s26  }
  0x23   : > { %p283_p2 = pnand %p891_p0, %p282_p1 }
  0x24   : > { %s1218_s29 = sand.u32 (!%p283_p2), 1, %s1070_s28  }
  0x25   : > { %286 = sbr.rel (%p283_p2) target bundleno = 652 (0x28c), region = 52  ;;  %s289_s13 = scalar_lea.sflag (!%p283_p2), [#allocation4], %s1218_s29 }
  0x26   : > { %s917_s14 = smul.u32 (!%p283_p2), 48, %s1218_s29 }
  0x28   : > { %s292_s19 = scalar_lea.vmem (!%p283_p2), [#allocation3], %s917_s14 }
  0x2a   : > { %1057 = dma.done.wait (%p1179_p6), %s289_s13, 768  }
  0x2b   : > { %1059 = vsyncadd (%p1179_p6), %s289_s13, 4294966528  ;;  %v1083_v0 = vmov 0   ;;  %v1228_v1 = vld [vmem:[%s292_s19 + $0x18] sm:$0xff]  ;;  %v1230_v2 = vld [vmem:[%s292_s19 + $0x20] sm:$0xff]  ;;  %vm341_vm0 = vcmask 130048   ;;  %s1084_s22 = smov 110   ;;  %v425_v29 = vlaneseq }
  0x2c   : > { %979 = vset.pattern.permute.xlu0 %v1083_v0  ;;  %980 = vset.pattern.permute.xlu1 %v1083_v0  ;;  %v1232_v3 = vld [vmem:[%s292_s19 + $0x28] sm:$0xff]  ;;  %v1236_v4 = vld [vmem:[%s292_s19] sm:$0xff]  ;;  %v1240_v6 = vld [vmem:[%s292_s19 + $0x10] sm:$0xff]  ;;  %s1085_s23 = smov 109   ;;  %s1086_s18 = smov 127   ;;  %vm590_vm5 = vcmask 1043456  }
  0x2d   : > { %981 = vset.pattern.permute.xlu2 %v1083_v0  ;;  %359 = vmatpush.msra.mxu0 %v1228_v1  ;;  %v1238_v5 = vld [vmem:[%s292_s19 + $0x8] sm:$0xff]  ;;  %s1087_s20 = smov 1   ;;  %s1088_s26 = smov 111   ;;  %v666_v26 = vld [vmem:[%s1429_s7 + $0x8] sm:$0xff]  ;;  %v1262_v31 = vand.u32 127, %v425_v29  ;;  %vm586_vm10 = vcmask 293888  }
  0x2e   : > { %379 = vmatpush.msra.mxu1 %v1230_v2  ;;  %399 = vmatpush.msra.mxu2 %v1232_v3  ;;  %v328_v7 = vld [vmem:[%s1424_s2] sm:$0xf]  ;;  %s1089_s13 = smov 18   ;;  %s1090_s19 = smov 17   ;;  %vm677_vm11 = vcmask 31744  }
  0x2f   : > { %360 = vmatpush.msra.mxu0 %v1236_v4  ;;  %v335_v8 = vld [vmem:[%s1427_s5] sm:$0xf]  ;;  %s1091_s15 = smov 19   ;;  %vm535_vm1 = vcmp.lt.s32.totalorder %v1262_v31, 110  ;;  %vm500_vm2 = vcmp.lt.s32.totalorder %v1262_v31, 127  ;;  %vm557_vm3 = vcmp.lt.s32.totalorder %v1262_v31, 109 }
  0x30   : > { %380 = vmatpush.msra.mxu1 %v1238_v5  ;;  %400 = vmatpush.msra.mxu2 %v1240_v6  ;;  %v408_v10 = vld [vmem:[%s1423_s1] sm:$0x7]  ;;  %vm522_vm4 = vcmp.lt.s32.totalorder %v1262_v31, 111  ;;  %vm475_vm6 = vcmp.lt.s32.totalorder %v1262_v31, 1  ;;  %vm462_vm7 = vcmp.lt.s32.totalorder %v1262_v31, 17  ;;  %vm440_vm8 = vcmp.lt.s32.totalorder %v1262_v31, 18 }
  0x31   : > { %892 = vmatmul.msk.f32.vlgmr.msra.gmra.mxu0 %vm341_vm0, %v328_v7  ;;  %893 = vmatmul.msk.f32.vlgmr.msra.gmra.mxu1 %vm341_vm0, %v328_v7  ;;  %v410_v13 = vperm.slane %v408_v10, 0  ;;  %v411_v16 = vperm.slane %v408_v10, 1  ;;  %v412_v23 = vperm.slane %v408_v10, 2  ;;  %vm427_vm9 = vcmp.lt.s32.totalorder %v1262_v31, 19  ;;  %s914_s24 = smul.u32 24, %s1161_s9  ;;  %s799_s21 = scalar_lea.sflag [#allocation5], %s1218_s29 }
  0x32   : > { %894 = vmatmul.msk.f32.vlgmr.msra.gmra.mxu2 %vm341_vm0, %v328_v7  ;;  %338 = vperm.xlu0 %979, %v335_v8  }
  0xa4   : > { %v339_v9 = vpop.permute.xlu0 %338 }
  0xae   : > { %v362_v11 = vpop.f32.mrf.mxu0  ;;  %v382_v14 = vpop.f32.mrf.mxu1 }
  0xaf   : > { %v363_v12 = vadd.f32 %v362_v11, %v339_v9  ;;  %v383_v15 = vadd.f32 %v382_v14, %v339_v9  ;;  %v580_v11 = vld [vmem:[%s1428_s6] sm:$0xf] }
  0xb1   : > { %v405_v17 = vmax.f32 %v363_v12, 0.0  ;;  %v406_v18 = vmax.f32 %v383_v15, 0.0 }
  0xb3   : > { %v416_v19 = vmul.f32 %v410_v13, %v405_v17  ;;  %v417_v20 = vmul.f32 %v411_v16, %v406_v18 }
  0xb5   : > { %491 = vst [vmem:[#allocation2 + $0x8] sm:$0xf] %v416_v19  ;;  %v402_v21 = vpop.f32.mrf.mxu2  ;;  %529 = vrot.lane.b32.xlu0 %v416_v19, %s1084_s22  ;;  %553 = vrot.lane.b32.xlu2 %v417_v20, %s1085_s23 }
  0xb6   : > { %492 = vst [vmem:[#allocation2 + $0x48] sm:$0xf] %v417_v20  ;;  %v403_v22 = vadd.f32 %v402_v21, %v339_v9  ;;  %531 = vrot.lane.b32.xlu1 %v417_v20, %s1084_s22 }
  0xb8   : > { %v407_v24 = vmax.f32 %v403_v22, 0.0 }
  0xba   : > { %v418_v25 = vmul.f32 %v412_v23, %v407_v24 }
  0xbc   : > { %493 = vst [vmem:[#allocation2 + $0x40] sm:$0xf] %v418_v25 }
  0xbd   : > { %496 = vrot.lane.b32.xlu0 %v417_v20, %s1086_s18  ;;  %494 = vrot.lane.b32.xlu2 %v416_v19, %s1086_s18 }
  0xbe   : > { %551 = vrot.lane.b32.xlu1 %v416_v19, %s1085_s23 }
  0xc5   : > { %469 = vrot.lane.b32.xlu0 %v416_v19, %s1087_s20  ;;  %518 = vrot.lane.b32.xlu2 %v417_v20, %s1088_s26 }
  0xc6   : > { %516 = vrot.lane.b32.xlu1 %v416_v19, %s1088_s26 }
  0xcd   : > { %471 = vrot.lane.b32.xlu0 %v417_v20, %s1087_s20  ;;  %434 = vrot.lane.b32.xlu2 %v416_v19, %s1089_s13 }
  0xce   : > { %456 = vrot.lane.b32.xlu1 %v416_v19, %s1090_s19 }
  0xd5   : > { %438 = vrot.lane.b32.xlu0 %v418_v25, %s1089_s13  ;;  %419 = vrot.lane.b32.xlu2 %v416_v19, %s1091_s15 }
  0xd6   : > { %473 = vrot.lane.b32.xlu1 %v418_v25, %s1087_s20 }
  0xdd   : > { %533 = vrot.lane.b32.xlu0 %v418_v25, %s1084_s22  ;;  %460 = vrot.lane.b32.xlu2 %v418_v25, %s1090_s19 }
  0xde   : > { %555 = vrot.lane.b32.xlu1 %v418_v25, %s1085_s23 }
  0xe5   : > { %423 = vrot.lane.b32.xlu0 %v418_v25, %s1091_s15  ;;  %520 = vrot.lane.b32.xlu2 %v418_v25, %s1088_s26  ;;  %s1032_s26 = scalar_lea.hbm %s1430_s8, 96 }
  0xe6   : > { %498 = vrot.lane.b32.xlu1 %v418_v25, %s1086_s18 }
  0xed   : > { %421 = vrot.lane.b32.xlu0 %v417_v20, %s1091_s15  ;;  %458 = vrot.lane.b32.xlu2 %v417_v20, %s1090_s19  ;;  %s325_s15 = scalar_lea.vmem [#allocation6], %s917_s14  ;;  %s810_s14 = scalar_lea.hbm %s1430_s8, %s914_s24 }
  0xee   : > { %436 = vrot.lane.b32.xlu1 %v417_v20, %s1089_s13  ;;  %s811_s9 = sshll.u32 %s325_s15, 4  ;;  %s813_s12 = sshll.u32 %s810_s14, 4  ;;  %s812_s9 = int_to_ptr.vmem [resolvable:$true] %s811_s9  ;;  %s814_s12 = int_to_ptr.hbm [resolvable:$true] %s813_s12 }
  0xef   : > { %s1026_s22 = sshra.s32 %s814_s12, 4  ;;  %s1027_s22 = int_to_ptr.hbm [resolvable:$true] %s1026_s22 }
  0xf0   : > { %s1028_s23 = scalar_lea.hbm %s1027_s22, 48  ;;  %p1033_p3 = scmp.lt.s32.totalorder %s1027_s22, %s1430_s8 }
  0xf1   : > { %p1029_p6 = scmp.ne.s32.totalorder %s1027_s22, %s1028_s23  ;;  %p1034_p4 = scmp.lt.s32.totalorder %s1032_s26, %s1028_s23 }
  0xf3   : > { %p1030_p13 = pnand %p1029_p6, %p1186_p11  ;;  %p1035_p5 = por %p1034_p4, %p1033_p3 }
  0xf5   : > { %674 = vperm.xlu0 %979, %v666_v26   ;;  %p1031_p0 = pneg %p1030_p13 }
  0xf6   : > { %583 = vperm.xlu1 %980, %v580_v11  }
  0xf7   : > { %p1036_p7 = pnand %p1035_p5, %p1031_p0 }
 0x10f   : > { %v1258_v27 = vpop.permute.xlu2 %553 }
 0x117   : > { %v1260_v28 = vpop.permute.xlu2 %494 }
 0x11f   : > { %v519_v30 = vpop.permute.xlu2 %518 }
 0x127   : > { %v1265_v32 = vpop.permute.xlu0 %529  ;;  %v1269_v34 = vpop.permute.xlu2 %434 }
 0x128   : > { %v1267_v33 = vpop.permute.xlu1 %531 }
 0x129   : > { %v537_v35 = vsel %vm535_vm1, %v1265_v32, %v1267_v33 }
 0x12a   : > { %v542_v36 = vrot.slane %v537_v35, 4 }
 0x12c   : > { %548 = vst [vmem:[#allocation2 + $0x20] sm:$0xf0] %v542_v36 }
 0x12f   : > { %v1277_v37 = vpop.permute.xlu0 %496  ;;  %v1279_v38 = vpop.permute.xlu2 %419 }
 0x130   : > { %v552_v39 = vpop.permute.xlu1 %551  ;;  %v502_v40 = vsel %vm500_vm2, %v1260_v28, %v1277_v37 }
 0x131   : > { %v559_v41 = vsel %vm557_vm3, %v552_v39, %v1258_v27  ;;  %v507_v42 = vrot.slane %v502_v40, 4 }
 0x132   : > { %561 = vst [vmem:[#allocation2 + $0x60] sm:$0xf] %v559_v41 }
 0x133   : > { %513 = vst [vmem:[#allocation2 + $0x8] sm:$0xf0] %v507_v42 }
 0x137   : > { %v470_v43 = vpop.permute.xlu0 %469  ;;  %v461_v44 = vpop.permute.xlu2 %460 }
 0x138   : > { %v517_v45 = vpop.permute.xlu1 %516 }
 0x139   : > { %v524_v46 = vsel %vm522_vm4, %v517_v45, %v519_v30  ;;  %v577_v47 = vld [vmem:[#allocation2 + $0x60] sm:$0xf] }
 0x13a   : > { %526 = vst [vmem:[#allocation2 + $0x20] sm:$0xf] %v524_v46  ;;  %895 = vmatpush.msk.msra.mxu3 %vm590_vm5, %v577_v47  ;;  %v571_v57 = vld [vmem:[#allocation2 + $0x8] sm:$0xff] }
 0x13f   : > { %v472_v48 = vpop.permute.xlu0 %471  ;;  %v521_v49 = vpop.permute.xlu2 %520 }
 0x140   : > { %v457_v50 = vpop.permute.xlu1 %456  ;;  %v477_v51 = vsel %vm475_vm6, %v470_v43, %v472_v48  ;;  %v523_v52 = vsel %vm522_vm4, %v519_v30, %v521_v49  ;;  %v525_v53 = vsel %vm522_vm4, %v521_v49, %v517_v45 }
 0x141   : > { %v465_v54 = vsel %vm462_vm7, %v461_v44, %v457_v50  ;;  %v483_v55 = vrot.slane %v477_v51, 4  ;;  %v574_v56 = vld [vmem:[#allocation2 + $0x20] sm:$0xff]  ;;  %527 = vst [vmem:[#allocation2 + $0x10] sm:$0xf] %v523_v52 }
 0x142   : > { %612 = vmatpush.msra.mxu3 %v574_v56  ;;  %528 = vst [vmem:[#allocation2 + $0x38] sm:$0xf] %v525_v53  ;;  %v663_v53 = vld [vmem:[%s1426_s4] sm:$0xff] }
 0x143   : > { %466 = vst [vmem:[#allocation2 + $0x18] sm:$0xf] %v465_v54 }
 0x144   : > { %613 = vmatpush.msra.mxu3 %v571_v57  ;;  %489 = vst [vmem:[#allocation2 + $0x50] sm:$0xf0] %v483_v55 }
 0x147   : > { %v439_v58 = vpop.permute.xlu0 %438  ;;  %v459_v59 = vpop.permute.xlu2 %458 }
 0x148   : > { %v474_v60 = vpop.permute.xlu1 %473  ;;  %v443_v61 = vsel %vm440_vm8, %v439_v58, %v1269_v34  ;;  %v463_v62 = vsel %vm462_vm7, %v459_v59, %v461_v44  ;;  %v464_v63 = vsel %vm462_vm7, %v457_v50, %v459_v59 }
 0x149   : > { %v476_v0 = vsel %vm475_vm6, %v472_v48, %v474_v60  ;;  %v478_v7 = vsel %vm475_vm6, %v474_v60, %v470_v43  ;;  %467 = vst [vmem:[#allocation2 + $0x50] sm:$0xf] %v464_v63  ;;  %v447_v10 = vrot.slane %v443_v61, 4  ;;  %v664_v60 = vld [vmem:[%s1426_s4 + $0x8] sm:$0xff] }
 0x14a   : > { %v482_v8 = vrot.slane %v478_v7, 4  ;;  %v484_v9 = vrot.slane %v476_v0, 4  ;;  %468 = vst [vmem:[#allocation2 + $0x68] sm:$0xf] %v463_v62 }
 0x14b   : > { %453 = vst [vmem:[#allocation2 + $0x30] sm:$0xf0] %v447_v10 }
 0x14c   : > { %488 = vst [vmem:[#allocation2 + $0x18] sm:$0xf0] %v482_v8 }
 0x14d   : > { %490 = vst [vmem:[#allocation2 + $0x68] sm:$0xf0] %v484_v9 }
 0x14f   : > { %v534_v12 = vpop.permute.xlu0 %533 }
 0x150   : > { %v556_v13 = vpop.permute.xlu1 %555  ;;  %v536_v14 = vsel %vm535_vm1, %v1267_v33, %v534_v12  ;;  %v538_v15 = vsel %vm535_vm1, %v534_v12, %v1265_v32 }
 0x151   : > { %v558_v16 = vsel %vm557_vm3, %v1258_v27, %v556_v13  ;;  %v560_v17 = vsel %vm557_vm3, %v556_v13, %v552_v39  ;;  %v543_v18 = vrot.slane %v536_v14, 4  ;;  %v544_v19 = vrot.slane %v538_v15, 4 }
 0x152   : > { %562 = vst [vmem:[#allocation2 + $0x70] sm:$0xf] %v558_v16 }
 0x153   : > { %563 = vst [vmem:[#allocation2 + $0x28] sm:$0xf] %v560_v17  ;;  %v568_v20 = vld [vmem:[#allocation2 + $0x18] sm:$0xff] }
 0x154   : > { %549 = vst [vmem:[#allocation2 + $0x10] sm:$0xf0] %v543_v18  ;;  %614 = vmatpush.msra.mxu3 %v568_v20  ;;  %v570_v47 = vld [vmem:[#allocation2 + $0x68] sm:$0xff] }
 0x155   : > { %550 = vst [vmem:[#allocation2 + $0x38] sm:$0xf0] %v544_v19 }
 0x157   : > { %v424_v21 = vpop.permute.xlu0 %423 }
 0x158   : > { %v499_v22 = vpop.permute.xlu1 %498  ;;  %v430_v23 = vsel %vm427_vm9, %v424_v21, %v1279_v38 }
 0x159   : > { %v501_v24 = vsel %vm500_vm2, %v1277_v37, %v499_v22  ;;  %v503_v25 = vsel %vm500_vm2, %v499_v22, %v1260_v28  ;;  %431 = vst [vmem:[#allocation2 + $0x30] sm:$0xf] %v430_v23  ;;  %v578_v26 = vld [vmem:[#allocation2 + $0x70] sm:$0xf]  ;;  %v564_v28 = vld [vmem:[%s1425_s3] sm:$0xf] }
 0x15a   : > { %v508_v27 = vrot.slane %v501_v24, 4  ;;  %v509_v29 = vrot.slane %v503_v25, 4  ;;  %897 = vmatpush.msk.msrb.mxu0 %vm590_vm5, %v578_v26  ;;  %v579_v30 = vld [vmem:[#allocation2 + $0x28] sm:$0xf] }
 0x15b   : > { %899 = vmatpush.msk.msrb.mxu1 %vm590_vm5, %v579_v30  ;;  %v575_v32 = vld [vmem:[#allocation2 + $0x10] sm:$0xff] }
 0x15c   : > { %514 = vst [vmem:[#allocation2 + $0x48] sm:$0xf0] %v508_v27  ;;  %632 = vmatpush.msrb.mxu0 %v575_v32  ;;  %v576_v33 = vld [vmem:[#allocation2 + $0x38] sm:$0xff] }
 0x15d   : > { %515 = vst [vmem:[#allocation2 + $0x40] sm:$0xf0] %v509_v29  ;;  %652 = vmatpush.msrb.mxu1 %v576_v33 }
 0x15f   : > { %v422_v35 = vpop.permute.xlu0 %421 }
 0x160   : > { %v437_v36 = vpop.permute.xlu1 %436  ;;  %v428_v37 = vsel %vm427_vm9, %v422_v35, %v424_v21  ;;  %v429_v39 = vsel %vm427_vm9, %v1279_v38, %v422_v35  ;;  %v565_v40 = vld [vmem:[#allocation2 + $0x30] sm:$0xff] }
 0x161   : > { %v441_v41 = vsel %vm440_vm8, %v437_v36, %v439_v58  ;;  %v442_v42 = vsel %vm440_vm8, %v1269_v34, %v437_v36  ;;  %432 = vst [vmem:[#allocation2] sm:$0xf] %v429_v39  ;;  %615 = vmatpush.msra.mxu3 %v565_v40  ;;  %v569_v38 = vld [vmem:[#allocation2 + $0x50] sm:$0xff]  ;;  %v665_v34 = vld [vmem:[%s1429_s7] sm:$0xff] }
 0x162   : > { %v448_v43 = vrot.slane %v442_v42, 4  ;;  %v449_v44 = vrot.slane %v441_v41, 4  ;;  %433 = vst [vmem:[#allocation2 + $0x58] sm:$0xf] %v428_v37  ;;  %896 = vmatmul.msk.f32.vlgmr.msra.gmra.mxu3 %vm586_vm10, %v564_v28  ;;  %669 = vperm.xlu2 %981, %v665_v34  }
 0x163   : > { %v572_v45 = vld [vmem:[#allocation2 + $0x48] sm:$0xff] }
 0x164   : > { %454 = vst [vmem:[#allocation2] sm:$0xf0] %v448_v43  ;;  %633 = vmatpush.msrb.mxu0 %v572_v45  ;;  %v573_v46 = vld [vmem:[#allocation2 + $0x40] sm:$0xff] }
 0x165   : > { %455 = vst [vmem:[#allocation2 + $0x58] sm:$0xf0] %v449_v44  ;;  %653 = vmatpush.msrb.mxu1 %v573_v46 }
 0x166   : > { %634 = vmatpush.msrb.mxu0 %v569_v38 }
 0x167   : > { %654 = vmatpush.msrb.mxu1 %v570_v47  ;;  %v675_v62 = vpop.permute.xlu0 %674 }
 0x168   : > { %v584_v49 = vpop.permute.xlu1 %583 }
 0x16b   : > { %v566_v48 = vld [vmem:[#allocation2] sm:$0xff] }
 0x16c   : > { %635 = vmatpush.msrb.mxu0 %v566_v48  ;;  %v567_v31 = vld [vmem:[#allocation2 + $0x58] sm:$0xff] }
 0x16d   : > { %655 = vmatpush.msrb.mxu1 %v567_v31  ;;  %898 = vmatmul.msk.f32.vlgmr.msrb.gmra.mxu0 %vm586_vm10, %v564_v28 }
 0x16e   : > { %900 = vmatmul.msk.f32.vlgmr.msrb.gmra.mxu1 %vm586_vm10, %v564_v28 }
 0x1bc   : > { %v670_v61 = vpop.permute.xlu2 %669 }
 0x1e5   : > { %v617_v50 = vpop.f32.mrf.mxu3 }
 0x1e6   : > { %v618_v51 = vadd.f32 %v617_v50, %v584_v49 }
 0x1e8   : > { %v660_v52 = vmax.f32 %v618_v51, 0.0 }
 0x1ea   : > { %v637_v54 = vpop.f32.mrf.mxu0  ;;  %901 = vmatpush.msk.msrb.mxu2 %vm590_vm5, %v660_v52 }
 0x1eb   : > { %v638_v55 = vadd.f32 %v637_v54, %v584_v49  ;;  %v657_v56 = vpop.f32.mrf.mxu1  ;;  %902 = vmatmul.msk.f32.vlgmr.msrb.gmra.mxu2 %vm677_vm11, %v663_v53 }
 0x1ec   : > { %v658_v57 = vadd.f32 %v657_v56, %v584_v49 }
 0x1ed   : > { %v661_v58 = vmax.f32 %v638_v55, 0.0 }
 0x1ee   : > { %v662_v59 = vmax.f32 %v658_v57, 0.0 }
 0x1ef   : > { %904 = vmatpush.msk.msrb.mxu3 %vm590_vm5, %v661_v58 }
 0x1f0   : > { %907 = vmatpush.msk.msra.mxu0 %vm590_vm5, %v662_v59  ;;  %915 = vmatpush.msk.msra.mxu1 %vm590_vm5, %v662_v59 }
 0x1f1   : > { %905 = vmatmul.msk.f32.vlgmr.msrb.gmra.mxu3 %vm677_vm11, %v663_v53  ;;  %909 = vmatmul.msk.f32.vlgmr.msra.gmra.mxu1 %vm677_vm11, %v664_v60 }
 0x1f2   : > { %908 = vmatmul.msk.f32.vlgmr.msra.gmra.mxu0 %vm677_vm11, %v663_v53 }
 0x1f3   : > { %903 = vmatmul.msk.f32.gmra.mxu2 %vm677_vm11, %v664_v60 }
 0x1f9   : > { %906 = vmatmul.msk.f32.gmra.mxu3 %vm677_vm11, %v664_v60 }
 0x26e   : > { %v759_v63 = vpop.f32.mrf.mxu1  ;;  %v710_v0 = vpop.f32.mrf.mxu2 }
 0x26f   : > { %v760_v7 = vadd.f32 %v759_v63, %v675_v62  ;;  %v711_v8 = vadd.f32 %v710_v0, %v670_v61  ;;  %v756_v9 = vpop.f32.mrf.mxu0 }
 0x270   : > { %v757_v10 = vadd.f32 %v756_v9, %v670_v61 }
 0x271   : > { %v773_v11 = vadd.f32 %v760_v7, %v1232_v3  ;;  %v768_v12 = vadd.f32 %v711_v8, %v1236_v4 }
 0x272   : > { %v770_v13 = vadd.f32 %v757_v10, %v1240_v6 }
 0x273   : > { %v779_v14 = vmax.f32 %v773_v11, 0.0  ;;  %v774_v15 = vmax.f32 %v768_v12, 0.0 }
 0x274   : > { %v733_v16 = vpop.f32.mrf.mxu3  ;;  %v776_v17 = vmax.f32 %v770_v13, 0.0 }
 0x275   : > { %v785_v18 = vadd.f32 %v779_v14, %v1232_v3  ;;  %v734_v19 = vadd.f32 %v733_v16, %v670_v61  ;;  %v780_v20 = vadd.f32 %v774_v15, %v1236_v4 }
 0x276   : > { %v713_v21 = vpop.f32.mrf.mxu2  ;;  %v782_v22 = vadd.f32 %v776_v17, %v1240_v6 }
 0x277   : > { %v791_v23 = vmax.f32 %v785_v18, 0.0  ;;  %v714_v24 = vadd.f32 %v713_v21, %v675_v62  ;;  %v769_v25 = vadd.f32 %v734_v19, %v1238_v5  ;;  %v786_v26 = vmax.f32 %v780_v20, 0.0 }
 0x278   : > { %v788_v27 = vmax.f32 %v782_v22, 0.0 }
 0x279   : > { %797 = vst [vmem:[%s325_s15 + $0x28] sm:$0xff] %v791_v23  ;;  %v771_v29 = vadd.f32 %v714_v24, %v1228_v1  ;;  %v775_v30 = vmax.f32 %v769_v25, 0.0 }
 0x27a   : > { %792 = vst [vmem:[%s325_s15] sm:$0xff] %v786_v26 }
 0x27b   : > { %v777_v3 = vmax.f32 %v771_v29, 0.0  ;;  %v781_v4 = vadd.f32 %v775_v30, %v1238_v5  ;;  %794 = vst [vmem:[%s325_s15 + $0x10] sm:$0xff] %v788_v27 }
 0x27c   : > { %v736_v32 = vpop.f32.mrf.mxu3 }
 0x27d   : > { %v783_v6 = vadd.f32 %v777_v3, %v1228_v1  ;;  %v787_v33 = vmax.f32 %v781_v4, 0.0  ;;  %v737_v35 = vadd.f32 %v736_v32, %v675_v62 }
 0x27f   : > { %v789_v28 = vmax.f32 %v783_v6, 0.0  ;;  %793 = vst [vmem:[%s325_s15 + $0x8] sm:$0xff] %v787_v33  ;;  %v772_v36 = vadd.f32 %v737_v35, %v1230_v2 }
 0x281   : > { %795 = vst [vmem:[%s325_s15 + $0x18] sm:$0xff] %v789_v28  ;;  %v778_v37 = vmax.f32 %v772_v36, 0.0 }
 0x283   : > { %v784_v5 = vadd.f32 %v778_v37, %v1230_v2 }
 0x285   : > { %v790_v1 = vmax.f32 %v784_v5, 0.0 }
 0x287   : > { %796 = vst [vmem:[%s325_s15 + $0x20] sm:$0xff] %v790_v1 }
 0x288   : > { %1039 = shalt.err (!%p1036_p7)
}
 0x289   : > { %s1092_s29 = smov 384   ;;  %s1093_s15 = smov 768  }
 0x28a   : > { %s1094_s24 = smov 24  }
 0x28b   : > { %920 = dma.vmem_to_hbm [thread:$0]  (%p1186_p11), %s812_s9, 768, %s814_s12, %s799_s21, %s1092_s29, %s1093_s15, %s1094_s24  }
 0x28c PF: > { %s828_s25 = sand.u32 1, %s1066_s27   ;;  %p927_p8 = pnand %p889_p9, %p1190_p12 }
 0x28d   : > { %s829_s10 = scalar_lea.sflag [#allocation5], %s828_s25 }
 0x28e   : > { %p928_p10 = pneg %p927_p8 }
 0x290   : > { %1061 = dma.done.wait (%p928_p10), %s829_s10, 768  }
 0x291   : > { %1063 = vsyncadd (%p928_p10), %s829_s10, 4294966528  ;;  %s1438_s14 = sld [smem:[#allocation9_spill]]  ;;  %p21_p1 = scmp.ge.s32.totalorder %s1165_s11, 4  }
 0x292   : > { %s1439_s29 = sld [smem:[#allocation10_spill]]  ;;  %s1440_s27 = smov %s1070_s28 }
 0x293   : > { %s1442_s30 = smov %s1165_s11  ;;  %23 = sbr.rel (!%p21_p1) target bundleno = 5 (0x5), region = 97 }
 0x297   : > { %s1441_s28 = smov %s1438_s14 }
 0x298   :  { %835 = vsyncpa [#allocation4], 1 }
 0x299   :  { %837 = vsyncpa [#allocation4 + $0x1], 1 }
 0x29a   :  { %838 = vsyncpa [#allocation5], 1 }
 0x29b   :  { %840 = vsyncpa [#allocation5 + $0x1], 1 }

</bundles_post_ra>
